<compile_context>
chip_gen: v7x
topology: tpu7x:2x2x1
jax: 0.10.0
libtpu: 0.0.40
codegen_flags: <defaults>
</compile_context>

<pallas_src>
import math
from functools import partial

import jax
import jax.numpy as jnp
from jax.experimental import pallas as pl
from jax.experimental.pallas import tpu as pltpu

_EPS = 1e-5    # matches nn.LayerNorm default


def _attention_kernel(x_ref, w_ref, p_ref, out_ref, *, inv_h):
    """One batch tile: out = LayerNorm(x @ W_fused + b_fused) * gamma + beta.

    Exact simplification of the reference module: seq length is 1, so
    softmax(q k^T / sqrt(H)) == 1.0 and context == v; the v- and output-
    projections have been fused host-side into W_fused / b_fused.

    p_ref rows: 0 = b_fused, 1 = gamma, 2 = beta (rows 3..7 unused padding).
    """
    x = x_ref[...]                                                   # [tb, din]
    out = jnp.dot(x, w_ref[...],
                  preferred_element_type=jnp.float32) + p_ref[0:1, :]   # [tb, H]

    # LayerNorm (biased variance, matching nn.LayerNorm).
    mean = jnp.sum(out, axis=-1, keepdims=True) * inv_h
    centered = out - mean
    var = jnp.sum(centered * centered, axis=-1, keepdims=True) * inv_h
    normed = centered * jax.lax.rsqrt(var + _EPS)
    out_ref[...] = normed * p_ref[1:2, :] + p_ref[2:3, :]


def prepare_params(params):
    """One-time host-side prep: fuse Wv@Wo and pack the small vectors."""
    w_fused = params["wv"] @ params["wo"]                       # [din, H]
    b_fused = params["bv"] @ params["wo"] + params["bo"]        # [1, H]
    H = w_fused.shape[1]
    packed = jnp.zeros((8, H), jnp.float32)                     # sublane-aligned
    packed = packed.at[0].set(b_fused[0])
    packed = packed.at[1].set(params["gamma"][0])
    packed = packed.at[2].set(params["beta"][0])
    return {"w_fused": w_fused, "packed": packed}


def attention_forward(x, prep, *, max_tile=4096, min_rows_for_split=256):
    """x: [B, input_dim] float32 -> [B, hidden_dim] float32."""
    B, din = x.shape
    w = prep["w_fused"]
    packed = prep["packed"]
    H = w.shape[1]

    def cdiv(a, b):
        return -(-a // b)

    def round_up(a, m):
        return cdiv(a, m) * m

    # Pick the number of grid steps first, then a tile that minimizes padding.
    g = cdiv(B, max_tile)
    if g < 2 and B >= min_rows_for_split:
        g = 2                       # >=2 grid steps so v7x's two TCs both get work
    tb = round_up(cdiv(B, g), 8)    # batch tile, multiple of 8 sublanes
    grid_n = cdiv(B, tb)
    b_pad = grid_n * tb

    x_p = x if b_pad == B else jnp.pad(x, ((0, b_pad - B), (0, 0)))

    out = pl.pallas_call(
        partial(_attention_kernel, inv_h=1.0 / H),
        out_shape=jax.ShapeDtypeStruct((b_pad, H), jnp.float32),
        grid=(grid_n,),
        in_specs=[
            pl.BlockSpec((tb, din), lambda i: (i, 0)),   # x, pipelined over batch
            pl.BlockSpec((din, H), lambda i: (0, 0)),    # fused weight, resident
            pl.BlockSpec((8, H), lambda i: (0, 0)),      # packed bias/gamma/beta
        ],
        out_specs=pl.BlockSpec((tb, H), lambda i: (i, 0)),
        compiler_params=pltpu.CompilerParams(
            dimension_semantics=("parallel",)),          # batch axis -> both TCs
    )(x_p, w, packed)

    return out if b_pad == B else out[:B]


def init_params(key, input_dim, hidden_dim):
    """Deterministic synthetic parameters (Linear weights stored as [in, out])."""
    keys = jax.random.split(key, 8)
    bound_in = 1.0 / math.sqrt(input_dim)
    bound_h = 1.0 / math.sqrt(hidden_dim)

    def lin(kw, kb, din, dout, bound):
        w = jax.random.uniform(kw, (din, dout), jnp.float32, -bound, bound)
        b = jax.random.uniform(kb, (1, dout), jnp.float32, -bound, bound)
        return w, b

    wq, bq = lin(keys[0], keys[1], input_dim, hidden_dim, bound_in)
    wk, bk = lin(keys[2], keys[3], input_dim, hidden_dim, bound_in)
    wv, bv = lin(keys[4], keys[5], input_dim, hidden_dim, bound_in)
    wo, bo = lin(keys[6], keys[7], hidden_dim, hidden_dim, bound_h)
    return {
        "wq": wq, "bq": bq, "wk": wk, "bk": bk, "wv": wv, "bv": bv,
        "wo": wo, "bo": bo,
        "gamma": jnp.ones((1, hidden_dim), jnp.float32),
        "beta": jnp.zeros((1, hidden_dim), jnp.float32),
    }


def reference_forward(x, params):
    """Pure-JAX reference matching the PyTorch forward (q/k/softmax included)."""
    H = params["wv"].shape[1]
    q = (x @ params["wq"] + params["bq"])[:, None, :]
    k = (x @ params["wk"] + params["bk"])[:, None, :]
    v = (x @ params["wv"] + params["bv"])[:, None, :]
    scores = jnp.matmul(q, jnp.swapaxes(k, -2, -1)) / math.sqrt(H)
    probs = jax.nn.softmax(scores, axis=-1)
    context = jnp.matmul(probs, v)[:, 0, :]
    out = context @ params["wo"] + params["bo"]
    mean = jnp.mean(out, axis=-1, keepdims=True)
    var = jnp.mean((out - mean) ** 2, axis=-1, keepdims=True)
    return (out - mean) / jnp.sqrt(var + _EPS) * params["gamma"] + params["beta"]


if __name__ == "__main__":
    vision_dim = 16
    instruction_dim = 15
    hidden_dim = 32
    input_dim = vision_dim + instruction_dim + 1   # 32
    batch = 8

    key = jax.random.PRNGKey(0)
    k_x, k_p = jax.random.split(key)
    x = jax.random.normal(k_x, (batch, input_dim), jnp.float32)
    params = init_params(k_p, input_dim, hidden_dim)

    prep = prepare_params(params)                  # one-time host-side fusion
    out = attention_forward(x, prep)
    out = jax.block_until_ready(out)

    ref = reference_forward(x, params)
    assert out.shape == (batch, hidden_dim)
    assert jnp.allclose(out, ref, atol=1e-5, rtol=1e-5), "mismatch vs reference"

    print("KERNEL_OK")
</pallas_src>

<mosaic_0001>
module attributes {stable_mosaic.version = 11 : i64} {
  func.func @_attention_kernel(%arg0: i32, %arg1: memref<8x32xf32, #tpu.memory_space<vmem>>, %arg2: memref<32x32xf32, #tpu.memory_space<vmem>>, %arg3: memref<8x32xf32, #tpu.memory_space<vmem>>, %arg4: memref<8x32xf32, #tpu.memory_space<vmem>>) attributes {dimension_semantics = [#tpu.dimension_semantics<parallel>], iteration_bounds = array<i64: 1>, scalar_prefetch = 0 : i64, scratch_operands = 0 : i64, tpu.core_type = #tpu.core_type<tc>, window_params = [{transform_indices = @transform_0, window_bounds = array<i64: 8, 32>}, {pipeline_mode = #tpu.pipeline_mode<synchronous>, transform_indices = @transform_1, window_bounds = array<i64: 32, 32>}, {pipeline_mode = #tpu.pipeline_mode<synchronous>, transform_indices = @transform_2, window_bounds = array<i64: 8, 32>}, {transform_indices = @transform_3, window_bounds = array<i64: 8, 32>}]} {
    %c0 = arith.constant 0 : index
    %c0_0 = arith.constant 0 : index
    %0 = vector.load %arg1[%c0, %c0_0] : memref<8x32xf32, #tpu.memory_space<vmem>>, vector<8x32xf32>
    %c0_1 = arith.constant 0 : index
    %c0_2 = arith.constant 0 : index
    %1 = vector.load %arg2[%c0_1, %c0_2] : memref<32x32xf32, #tpu.memory_space<vmem>>, vector<32x32xf32>
    %cst = arith.constant dense<0.000000e+00> : vector<8x32xf32>
    %2 = tpu.matmul %0, %1, %cst {dimension_numbers = #tpu.dot_dimension_numbers<[1], [0], [0], [1], [0, 0, 1, 1], [], []>} : vector<8x32xf32>, vector<32x32xf32>, vector<8x32xf32> -> vector<8x32xf32>
    %c0_3 = arith.constant 0 : index
    %c0_4 = arith.constant 0 : index
    %3 = vector.load %arg3[%c0_3, %c0_4] : memref<8x32xf32, #tpu.memory_space<vmem>>, vector<1x32xf32>
    %4 = vector.broadcast %3 : vector<1x32xf32> to vector<8x32xf32>
    %5 = arith.addf %2, %4 : vector<8x32xf32>
    %cst_5 = arith.constant dense<0.000000e+00> : vector<8xf32>
    %6 = vector.multi_reduction <add>, %5, %cst_5 [1] : vector<8x32xf32> to vector<8xf32>
    %7 = vector.shape_cast %6 : vector<8xf32> to vector<8x1xf32>
    %cst_6 = arith.constant 3.125000e-02 : f32
    %8 = vector.broadcast %cst_6 : f32 to vector<8x1xf32>
    %9 = arith.mulf %7, %8 : vector<8x1xf32>
    %10 = vector.broadcast %9 : vector<8x1xf32> to vector<8x32xf32>
    %11 = arith.subf %5, %10 : vector<8x32xf32>
    %12 = arith.mulf %11, %11 : vector<8x32xf32>
    %cst_7 = arith.constant dense<0.000000e+00> : vector<8xf32>
    %13 = vector.multi_reduction <add>, %12, %cst_7 [1] : vector<8x32xf32> to vector<8xf32>
    %14 = vector.shape_cast %13 : vector<8xf32> to vector<8x1xf32>
    %cst_8 = arith.constant 3.125000e-02 : f32
    %15 = vector.broadcast %cst_8 : f32 to vector<8x1xf32>
    %16 = arith.mulf %14, %15 : vector<8x1xf32>
    %cst_9 = arith.constant 9.99999974E-6 : f32
    %17 = vector.broadcast %cst_9 : f32 to vector<8x1xf32>
    %18 = arith.addf %16, %17 : vector<8x1xf32>
    %19 = math.rsqrt %18 : vector<8x1xf32>
    %20 = vector.broadcast %19 : vector<8x1xf32> to vector<8x32xf32>
    %21 = arith.mulf %11, %20 : vector<8x32xf32>
    %c1 = arith.constant 1 : index
    %c0_10 = arith.constant 0 : index
    %22 = vector.load %arg3[%c1, %c0_10] : memref<8x32xf32, #tpu.memory_space<vmem>>, vector<1x32xf32>
    %23 = vector.broadcast %22 : vector<1x32xf32> to vector<8x32xf32>
    %24 = arith.mulf %21, %23 : vector<8x32xf32>
    %c2 = arith.constant 2 : index
    %c0_11 = arith.constant 0 : index
    %25 = vector.load %arg3[%c2, %c0_11] : memref<8x32xf32, #tpu.memory_space<vmem>>, vector<1x32xf32>
    %26 = vector.broadcast %25 : vector<1x32xf32> to vector<8x32xf32>
    %27 = arith.addf %24, %26 : vector<8x32xf32>
    %c0_12 = arith.constant 0 : index
    %c0_13 = arith.constant 0 : index
    %28 = vector.load %arg4[%c0_12, %c0_13] : memref<8x32xf32, #tpu.memory_space<vmem>>, vector<8x32xf32>
    tpu.vector_store %arg4[%c0_12, %c0_13], %27 {strides = array<i32>} : memref<8x32xf32, #tpu.memory_space<vmem>>, vector<8x32xf32>,
    return
  }
  func.func @transform_0(%arg0: i32) -> (i32, i32) {
    %c0_i32 = arith.constant 0 : i32
    %c0_i32_0 = arith.constant 0 : i32
    return %arg0, %c0_i32 : i32, i32
  }
  func.func @transform_1(%arg0: i32) -> (i32, i32) {
    %c0_i32 = arith.constant 0 : i32
    %c0_i32_0 = arith.constant 0 : i32
    %c0_i32_1 = arith.constant 0 : i32
    return %c0_i32, %c0_i32_0 : i32, i32
  }
  func.func @transform_2(%arg0: i32) -> (i32, i32) {
    %c0_i32 = arith.constant 0 : i32
    %c0_i32_0 = arith.constant 0 : i32
    %c0_i32_1 = arith.constant 0 : i32
    return %c0_i32, %c0_i32_0 : i32, i32
  }
  func.func @transform_3(%arg0: i32) -> (i32, i32) {
    %c0_i32 = arith.constant 0 : i32
    %c0_i32_0 = arith.constant 0 : i32
    return %arg0, %c0_i32 : i32, i32
  }
}

</mosaic_0001>

<bundles_post_ra>
// kernel: tpu_custom_call.1
= control target key start
LH: loop header
LB: loop body
LE: loop exit
PB: predicated region body
PF: predicated region fallthrough
CT: control target
= control target key end

     0   :  { %8 = vsyncpa [#allocation3], 0  ;;  %s390_s0 = inlined_call_operand.hbm [shape: f32[8,32], index: 0, kind: input, shape index: {}]   ;;  %s391_s1 = inlined_call_operand.hbm [shape: f32[32,32], index: 1, kind: input, shape index: {}]   ;;  %s392_s2 = inlined_call_operand.hbm [shape: f32[8,32], index: 2, kind: input, shape index: {}]   ;;  %s393_s3 = inlined_call_operand.hbm [shape: f32[8,32], index: 3, kind: output, shape index: {}]  }
   0x1   :  { %9 = vsyncpa [#allocation6], 0 }
   0x2   :  { %10 = vsyncpa [#allocation4], 0  ;;  %s309_s12 = smov [#allocation5]   ;;  %s215_s16 = scalar_lea.hbm %s391_s1, 512 }
   0x3   :  { %s26_s13 = sshll.u32 %s309_s12, 4  ;;  %p216_p0 = scmp.ne.s32.totalorder %s391_s1, %s215_s16  ;;  %s27_s13 = int_to_ptr.vmem [resolvable:$true] %s26_s13 }
   0x4   :  { %p219_p1 = scmp.lt.u32.totalorder %s215_s16, %s391_s1 }
   0x6   :  { %p221_p2 = pnand %p219_p1, %p216_p0 }
   0x8   :  { %224 = shalt.err (!%p221_p2)
}
   0x9   :  { %s225_s21 = scalar_lea.vmem %s27_s13, 512  ;;  %p230_p4 = scmp.lt.s32.totalorder %s27_s13, %s27_s13 }
   0xa   :  { %p226_p3 = scmp.ne.s32.totalorder %s27_s13, %s225_s21  ;;  %p231_p5 = scmp.lt.s32.totalorder %s225_s21, %s225_s21 }
   0xc   :  { %p232_p6 = por %p231_p5, %p230_p4 }
   0xe   :  { %p233_p7 = pnand %p232_p6, %p226_p3 }
  0x10   :  { %236 = shalt.err (!%p233_p7)
}
  0x11   :  { %s310_s22 = smov 128   ;;  %s311_s23 = smov 8  }
  0x12   :  { %32 = dma.hbm_to_vmem [thread:$0]  %s391_s1, 512, %s27_s13, [#allocation6], %s310_s22, %s310_s22, %s311_s23  }
  0x13   :  { %s312_s26 = smov [#allocation2]   ;;  %s313_s28 = smov [#allocation7]  }
  0x14   :  { %s17_s27 = sshll.u32 %s312_s26, 4  ;;  %s39_s29 = sshll.u32 %s313_s28, 4  ;;  %s18_s27 = int_to_ptr.vmem [resolvable:$true] %s17_s27  ;;  %s40_s29 = int_to_ptr.vmem [resolvable:$true] %s39_s29 }
  0x15   :  { %s237_s5 = scalar_lea.hbm %s390_s0, 128 }
  0x16   :  { %p238_p8 = scmp.ne.s32.totalorder %s390_s0, %s237_s5  ;;  %p241_p9 = scmp.lt.u32.totalorder %s237_s5, %s390_s0 }
  0x18   :  { %p243_p10 = pnand %p241_p9, %p238_p8 }
  0x1a   :  { %246 = shalt.err (!%p243_p10)
}
  0x1b   :  { %s247_s1 = scalar_lea.vmem %s18_s27, 128  ;;  %p252_p12 = scmp.lt.s32.totalorder %s18_s27, %s18_s27 }
  0x1c   :  { %p248_p11 = scmp.ne.s32.totalorder %s18_s27, %s247_s1  ;;  %p253_p13 = scmp.lt.s32.totalorder %s247_s1, %s247_s1 }
  0x1e   :  { %p254_p0 = por %p253_p13, %p252_p12 }
  0x20   :  { %p255_p1 = pnand %p254_p0, %p248_p11 }
  0x22   :  { %258 = shalt.err (!%p255_p1)
}
  0x23   :  { %20 = dma.hbm_to_vmem [thread:$0]  %s390_s0, 128, %s18_s27, [#allocation3]  }
  0x24   :  { %s259_s14 = scalar_lea.hbm %s392_s2, 128 }
  0x25   :  { %p260_p2 = scmp.ne.s32.totalorder %s392_s2, %s259_s14  ;;  %p263_p3 = scmp.lt.u32.totalorder %s259_s14, %s392_s2 }
  0x27   :  { %p265_p4 = pnand %p263_p3, %p260_p2 }
  0x29   :  { %268 = shalt.err (!%p265_p4)
}
  0x2a   :  { %s269_s19 = scalar_lea.vmem %s40_s29, 128  ;;  %p274_p6 = scmp.lt.s32.totalorder %s40_s29, %s40_s29 }
  0x2b   :  { %p270_p5 = scmp.ne.s32.totalorder %s40_s29, %s269_s19  ;;  %p275_p7 = scmp.lt.s32.totalorder %s269_s19, %s269_s19 }
  0x2d   :  { %p276_p8 = por %p275_p7, %p274_p6 }
  0x2f   :  { %p277_p9 = pnand %p276_p8, %p270_p5 }
  0x31   :  { %280 = shalt.err (!%p277_p9)
}
  0x32   :  { %42 = dma.hbm_to_vmem [thread:$0]  %s392_s2, 128, %s40_s29, [#allocation6]  }
  0x33   :  { %303 = dma.done.wait [#allocation3], 128  }
  0x34   :  { %304 = vsyncadd [#allocation3], 4294967168 }
  0x35   :  { %305 = dma.done.wait [#allocation6], 640  }
  0x36   :  { %306 = vsyncadd [#allocation6], 4294966656  ;;  %v314_v0 = vmov 0.0|0.0   ;;  %vm315_vm0 = vmmov 0   ;;  %v316_v1 = vmov 0.0   ;;  %v53_v2 = vld [vmem:[#allocation5] sm:$0xff] }
  0x37   :  { %198 = vmatprep.subr.bf16.mxu0 %v314_v0  ;;  %195 = vmatprep.mubr.msk.f32.mxu0 %vm315_vm0, %v316_v1  ;;  %v54_v3 = vld [vmem:[#allocation5 + $0x8] sm:$0xff]  ;;  %v55_v4 = vld [vmem:[#allocation5 + $0x10] sm:$0xff]  ;;  %v56_v6 = vld [vmem:[#allocation5 + $0x18] sm:$0xff]  ;;  %vm62_vm1 = vcmask 261120   ;;  %s317_s2 = smov [#allocation8]  }
  0x38   :  { %v199_v5 = vpack.c.bf16 %v54_v3, %v53_v2  ;;  %v202_v7 = vpack.c.bf16 %v56_v6, %v55_v4  ;;  %v52_v8 = vld [vmem:[#allocation2] sm:$0xff]  ;;  %v178_v9 = vld [vmem:[#allocation7] ss:$0 sm:$0xff]  ;;  %v180_v23 = vld [vmem:[#allocation7 + $0x1] ss:$0 sm:$0xff]  ;;  %s168_s21 = sshll.u32 %s317_s2, 4  ;;  %s169_s21 = int_to_ptr.vmem [resolvable:$true] %s168_s21 }
  0x39   :  { %v181_v25 = vld [vmem:[#allocation7 + $0x2] ss:$0 sm:$0xff]  ;;  %s281_s22 = scalar_lea.vmem %s169_s21, 128  ;;  %p286_p11 = scmp.lt.s32.totalorder %s169_s21, %s169_s21 }
  0x3a   :  { %200 = vmatpush3.bf16.msra.mxu0 %v199_v5  ;;  %p282_p10 = scmp.ne.s32.totalorder %s169_s21, %s281_s22  ;;  %p287_p12 = scmp.lt.s32.totalorder %s281_s22, %s281_s22 }
  0x3b   :  { %201 = vmatprep.subr.bf16.mxu0 %v314_v0 }
  0x3c   :  { %p288_p13 = por %p287_p12, %p286_p11 }
  0x3e   :  { %203 = vmatpush3.bf16.msra.mxu0 %v202_v7  ;;  %p289_p0 = pnand %p288_p13, %p282_p10 }
  0x41   :  { %196 = vmatmul.mubr.msk.f32.vlgmr.msra.gmra.mrb[0].mxu0 %vm62_vm1, %v52_v8 }
 0x114   :  { %v132_v10 = vpop.f32.mrb[0].mxu0 }
 0x115   :  { %v133_v11 = vadd.f32 %v178_v9, %v132_v10  ;;  %v197_v12 = vpop.f32.mrb[1].mxu0 }
 0x117   :  { %v136_v13 = vsel %vm62_vm1, %v133_v11, 0.0 }
 0x118   :  { %137 = vadd.xlane.f32.xlu0 %v136_v13 }
 0x1a5   :  { %v138_v14 = vpop.xlane.xlu0 %137 }
 0x1a6   :  { %v139_v15 = vmul.f32 0.03125, %v138_v14 }
 0x1a8   :  { %v140_v16 = vsub.f32 %v133_v11, %v139_v15 }
 0x1aa   :  { %v141_v17 = vmul.f32 %v140_v16, %v140_v16 }
 0x1ac   :  { %v142_v18 = vsel %vm62_vm1, %v141_v17, 0.0 }
 0x1ad   :  { %143 = vadd.xlane.f32.xlu0 %v142_v18 }
 0x23a   :  { %v144_v19 = vpop.xlane.xlu0 %143 }
 0x23b   :  { %v145_v20 = vmul.f32 0.03125, %v144_v19 }
 0x23d   :  { %v146_v21 = vadd.f32 1e-05, %v145_v20 }
 0x23f   :  { %213 = vrsqrt.f32 %v146_v21 }
 0x249   :  { %v214_v22 = vpop.eup %213 }
 0x24a   :  { %v148_v24 = vmul.f32 %v214_v22, %v140_v16 }
 0x24c   :  { %v154_v26 = vmul.f32 %v180_v23, %v148_v24 }
 0x24e   :  { %v160_v27 = vadd.f32 %v181_v25, %v154_v26 }
 0x250   :  { %161 = vst.msk [vmem:[#allocation8] sm:$0xff] %vm62_vm1, %v160_v27 }
 0x251   :  { %292 = shalt.err (!%p289_p0)
}
 0x252   :  { %s293_s25 = scalar_lea.hbm %s393_s3, 128 }
 0x253   :  { %p294_p1 = scmp.ne.s32.totalorder %s393_s3, %s293_s25  ;;  %p297_p2 = scmp.lt.u32.totalorder %s293_s25, %s393_s3 }
 0x255   :  { %p299_p3 = pnand %p297_p2, %p294_p1 }
 0x257   :  { %302 = shalt.err (!%p299_p3)
}
 0x258   :  { %171 = dma.vmem_to_hbm [thread:$0]  %s169_s21, 128, %s393_s3, [#allocation4]  }
 0x259   :  { %307 = dma.done.wait [#allocation4], 128  }
 0x25a   :  { %308 = vsyncadd [#allocation4], 4294967168 }
 0x25b   :  { %175 = vsyncpa [#allocation3], 1 }
 0x25c   :  { %176 = vsyncpa [#allocation6], 1 }
 0x25d   :  { %177 = vsyncpa [#allocation4], 1 }

</bundles_post_ra>
